<compile_context>
chip_gen: v7x
topology: tpu7x:2x2x1
jax: 0.10.0
libtpu: 0.0.40
codegen_flags: <defaults>
</compile_context>

<pallas_src>
import functools

import jax
import jax.numpy as jnp
from jax.experimental import pallas as pl
from jax.experimental.pallas import tpu as pltpu

_LANES = 128


# ---------------------------------------------------------------------------
# Fused kernel.
#   slab_ref : [B, L] logits (lanes [0,C) = class logits, [C,C+A) = action
#              logits, remaining lanes = ignored zero pad)
#   meta_ref : [B, 3] int32 = [target_class, target_action, n_gt_boxes]
#   out_ref  : SMEM (8,) f32 =
#     [loss_class_ce, class_error, cardinality_error, loss_action_ce,
#      action_error, 0, 0, 0]
# ---------------------------------------------------------------------------
def _fused_loss_kernel(slab_ref, meta_ref, out_ref, *, C, A, inv_b):
    x = slab_ref[...].astype(jnp.float32)                      # [B, L]
    B, L = x.shape
    meta = meta_ref[...]                                       # [B, 3] int32

    lane = jax.lax.broadcasted_iota(jnp.int32, (B, L), 1)      # [B, L]
    lane_f = lane.astype(jnp.float32)
    cls_mask = lane < C
    act_mask = jnp.logical_and(lane >= C, lane < C + A)
    neg = jnp.float32(-3.0e38)

    tgt_cls = meta[:, 0:1]                                     # [B, 1] int32
    tgt_act_lane = meta[:, 1:2] + C                            # [B, 1] lane index
    tgt_len = meta[:, 2:3].astype(jnp.float32)                 # [B, 1] f32

    # ---- per-segment maxes (masked XLU max-reductions) -----------------------
    m_cls = jnp.max(jnp.where(cls_mask, x, neg), axis=-1, keepdims=True)   # [B,1]
    m_act = jnp.max(jnp.where(act_mask, x, neg), axis=-1, keepdims=True)   # [B,1]

    # ---- single shared exp pass over the whole slab (EUP once, not twice) ----
    shift = jnp.where(cls_mask, m_cls, m_act)                              # [B,L]
    e = jnp.exp(x - shift)                                                 # [B,L]
    sumexp_cls = jnp.sum(jnp.where(cls_mask, e, 0.0), axis=-1, keepdims=True)
    sumexp_act = jnp.sum(jnp.where(act_mask, e, 0.0), axis=-1, keepdims=True)

    # ---- target logits (masked sum-reductions; one-hot never materialized) ---
    tgt_logit_cls = jnp.sum(jnp.where(lane == tgt_cls, x, 0.0),
                            axis=-1, keepdims=True)                        # [B,1]
    tgt_logit_act = jnp.sum(jnp.where(lane == tgt_act_lane, x, 0.0),
                            axis=-1, keepdims=True)                        # [B,1]

    # ---- class segment: cross-entropy + top-1 error + cardinality ------------
    per_ce_cls = m_cls + jnp.log(sumexp_cls) - tgt_logit_cls               # [B,1]
    loss_class_ce = jnp.sum(per_ce_cls) * inv_b

    # first-max-index argmax inside the class segment (tie-consistent w/ argmax)
    is_max_cls = jnp.logical_and(cls_mask, x == m_cls)
    argmax_cls = jnp.min(jnp.where(is_max_cls, lane_f, jnp.float32(L)),
                         axis=-1, keepdims=True)                           # [B,1]
    correct_cls = (argmax_cls == tgt_cls.astype(jnp.float32)).astype(jnp.float32)
    class_error = 100.0 - jnp.sum(correct_cls) * (100.0 * inv_b)

    # cardinality: predicted box is "non-empty" iff argmax != no-object (= C-1)
    non_empty = (argmax_cls != jnp.float32(C - 1)).astype(jnp.float32)     # [B,1]
    cardinality_error = jnp.sum(jnp.abs(non_empty - tgt_len)) * inv_b

    # ---- action segment: cross-entropy + top-1 error -------------------------
    per_ce_act = m_act + jnp.log(sumexp_act) - tgt_logit_act
    loss_action_ce = jnp.sum(per_ce_act) * inv_b

    # collapsed accuracy test: target logit equals segment max
    # (tie-equivalent to argmax==target for continuous logits; saves an XLU min)
    correct_act = (tgt_logit_act == m_act).astype(jnp.float32)
    action_error = 100.0 - jnp.sum(correct_act) * (100.0 * inv_b)

    out_ref[0] = loss_class_ce
    out_ref[1] = class_error
    out_ref[2] = cardinality_error
    out_ref[3] = loss_action_ce
    out_ref[4] = action_error
    out_ref[5] = jnp.float32(0.0)
    out_ref[6] = jnp.float32(0.0)
    out_ref[7] = jnp.float32(0.0)


# ---------------------------------------------------------------------------
# SetCriterion forward (thin JAX glue around the single fused kernel).
# ---------------------------------------------------------------------------
def set_criterion_forward(outputs, targets, num_classes, num_actions,
                          losses=("labels", "cardinality", "action")):
    """outputs:
         'pred_logits'  : [B, 1, num_classes]   (query_for_each_object -> squeeze(1))
         'pred_actions' : [B, 1, num_actions]   (squeeze(1))
       targets: list (len B) of dicts with 'labels' [n_i] int32,
                'expert_action' [1] int32 (n_i == 1 per the module's usage)
    """
    src_logits = outputs["pred_logits"][:, 0, :]        # [B, C]
    src_actions = outputs["pred_actions"][:, 0, :]      # [B, A]
    B = src_logits.shape[0]
    C, A = num_classes, num_actions

    # Pack both logit sets lane-dense into one [B, L] slab (L multiple of 128).
    L = -(-(C + A) // _LANES) * _LANES
    pad = L - C - A
    pieces = [src_logits, src_actions]
    if pad:
        pieces.append(jnp.zeros((B, pad), dtype=src_logits.dtype))
    slab = jnp.concatenate(pieces, axis=-1)             # [B, L]

    # Targets / gt lengths as one small int32 array (no one-hot materialization).
    tgt_cls = jnp.concatenate([t["labels"] for t in targets]).astype(jnp.int32)
    tgt_act = jnp.concatenate([t["expert_action"] for t in targets]).astype(jnp.int32)
    tgt_len = jnp.asarray([t["labels"].shape[0] for t in targets], dtype=jnp.int32)
    meta = jnp.stack([tgt_cls, tgt_act, tgt_len], axis=-1)   # [B, 3]

    kernel = functools.partial(_fused_loss_kernel, C=C, A=A, inv_b=1.0 / B)
    out = pl.pallas_call(
        kernel,
        out_shape=jax.ShapeDtypeStruct((8,), jnp.float32),
        in_specs=[
            pl.BlockSpec(memory_space=pltpu.MemorySpace.VMEM),   # slab
            pl.BlockSpec(memory_space=pltpu.MemorySpace.VMEM),   # meta (int32)
        ],
        out_specs=pl.BlockSpec(memory_space=pltpu.MemorySpace.SMEM),
    )(slab, meta)
    # TODO(synk): at DETR scale (large B*Q / aux decoder stages) switch to a
    # "parallel" row grid with VMEM partial-sum scratch finalized under
    # pl.when(last); unnecessary at this module's [B,1,C] shapes.

    result = {}
    if "labels" in losses:
        result["loss_class_ce"] = out[0]
        result["class_error"] = out[1]
    if "cardinality" in losses:
        result["cardinality_error"] = out[2]
    if "action" in losses:
        result["loss_action_ce"] = out[3]
        result["action_error"] = out[4]

    # TODO(synk): aux_outputs / enc_outputs branches require the Hungarian
    # matcher module (matcher=None here); omitted, as in the no-aux forward path.
    return result


# ---------------------------------------------------------------------------
# Pure-JAX reference for a sanity check.
# ---------------------------------------------------------------------------
def _reference(outputs, targets, num_classes, num_actions):
    src_logits = outputs["pred_logits"][:, 0, :]
    tgt = jnp.concatenate([t["labels"] for t in targets])
    logp = jax.nn.log_softmax(src_logits, axis=-1)
    loss_ce = -jnp.mean(jnp.take_along_axis(logp, tgt[:, None], axis=-1))
    acc = 100.0 * jnp.mean((jnp.argmax(src_logits, -1) == tgt).astype(jnp.float32))

    src_actions = outputs["pred_actions"][:, 0, :]
    tga = jnp.concatenate([t["expert_action"] for t in targets])
    logpa = jax.nn.log_softmax(src_actions, axis=-1)
    loss_a = -jnp.mean(jnp.take_along_axis(logpa, tga[:, None], axis=-1))
    acc_a = 100.0 * jnp.mean((jnp.argmax(src_actions, -1) == tga).astype(jnp.float32))

    card_pred = jnp.sum(
        (jnp.argmax(outputs["pred_logits"], -1) != num_classes - 1).astype(jnp.float32),
        axis=1,
    )
    tgt_len = jnp.array([t["labels"].shape[0] for t in targets], dtype=jnp.float32)
    card_err = jnp.mean(jnp.abs(card_pred - tgt_len))

    return {
        "loss_class_ce": loss_ce,
        "class_error": 100.0 - acc,
        "cardinality_error": card_err,
        "loss_action_ce": loss_a,
        "action_error": 100.0 - acc_a,
    }


if __name__ == "__main__":
    B, C, A = 8, 32, 16  # batch, num_classes (incl. no-object last), num_actions

    key = jax.random.PRNGKey(0)
    k1, k2, k3, k4 = jax.random.split(key, 4)

    outputs = {
        "pred_logits": jax.random.normal(k1, (B, 1, C), dtype=jnp.float32),
        "pred_actions": jax.random.normal(k2, (B, 1, A), dtype=jnp.float32),
    }
    labels = jax.random.randint(k3, (B,), 0, C, dtype=jnp.int32)
    actions = jax.random.randint(k4, (B,), 0, A, dtype=jnp.int32)
    targets = [
        {"labels": labels[i : i + 1], "expert_action": actions[i : i + 1]}
        for i in range(B)
    ]

    losses = set_criterion_forward(outputs, targets, C, A)
    losses = jax.tree_util.tree_map(jax.block_until_ready, losses)

    ref = _reference(outputs, targets, C, A)
    for k in ref:
        assert jnp.allclose(losses[k], ref[k], atol=1e-4, rtol=1e-4), (
            k, losses[k], ref[k])

    print("KERNEL_OK")
</pallas_src>

<mosaic_0001>
module attributes {stable_mosaic.version = 11 : i64} {
  func.func @_fused_loss_kernel(%arg0: memref<8x128xf32, #tpu.memory_space<vmem>>, %arg1: memref<8x3xi32, #tpu.memory_space<vmem>>, %arg2: memref<8xf32, #tpu.memory_space<smem>>) attributes {dimension_semantics = [], scalar_prefetch = 0 : i64, scratch_operands = 0 : i64, tpu.core_type = #tpu.core_type<tc>} {
    %c0 = arith.constant 0 : index
    %c0_0 = arith.constant 0 : index
    %0 = vector.load %arg0[%c0, %c0_0] : memref<8x128xf32, #tpu.memory_space<vmem>>, vector<8x128xf32>
    %c0_1 = arith.constant 0 : index
    %c0_2 = arith.constant 0 : index
    %1 = vector.load %arg1[%c0_1, %c0_2] : memref<8x3xi32, #tpu.memory_space<vmem>>, vector<8x3xi32>
    %2 = tpu.iota {dimensions = array<i32: 1>} : vector<8x128xi32>
    %3 = arith.sitofp %2 : vector<8x128xi32> to vector<8x128xf32>
    %c32_i32 = arith.constant 32 : i32
    %4 = vector.broadcast %c32_i32 : i32 to vector<8x128xi32>
    %5 = arith.cmpi slt, %2, %4 : vector<8x128xi32>
    %c32_i32_3 = arith.constant 32 : i32
    %6 = vector.broadcast %c32_i32_3 : i32 to vector<8x128xi32>
    %7 = arith.cmpi sge, %2, %6 : vector<8x128xi32>
    %c48_i32 = arith.constant 48 : i32
    %8 = vector.broadcast %c48_i32 : i32 to vector<8x128xi32>
    %9 = arith.cmpi slt, %2, %8 : vector<8x128xi32>
    %10 = arith.andi %7, %9 : vector<8x128xi1>
    %11 = vector.extract_strided_slice %1 {offsets = [0, 0], sizes = [8, 1], strides = [1, 1]} : vector<8x3xi32> to vector<8x1xi32>
    %12 = vector.extract_strided_slice %1 {offsets = [0, 1], sizes = [8, 1], strides = [1, 1]} : vector<8x3xi32> to vector<8x1xi32>
    %c32_i32_4 = arith.constant 32 : i32
    %13 = vector.broadcast %c32_i32_4 : i32 to vector<8x1xi32>
    %14 = arith.addi %12, %13 : vector<8x1xi32>
    %15 = vector.extract_strided_slice %1 {offsets = [0, 2], sizes = [8, 1], strides = [1, 1]} : vector<8x3xi32> to vector<8x1xi32>
    %16 = arith.sitofp %15 : vector<8x1xi32> to vector<8x1xf32>
    %cst = arith.constant -3.000000e+38 : f32
    %17 = vector.broadcast %cst : f32 to vector<8x128xf32>
    %18 = arith.select %5, %0, %17 : vector<8x128xi1>, vector<8x128xf32>
    %cst_5 = arith.constant dense<0xFF800000> : vector<8xf32>
    %19 = vector.multi_reduction <maximumf>, %18, %cst_5 [1] : vector<8x128xf32> to vector<8xf32>
    %20 = vector.shape_cast %19 : vector<8xf32> to vector<8x1xf32>
    %cst_6 = arith.constant -3.000000e+38 : f32
    %21 = vector.broadcast %cst_6 : f32 to vector<8x128xf32>
    %22 = arith.select %10, %0, %21 : vector<8x128xi1>, vector<8x128xf32>
    %cst_7 = arith.constant dense<0xFF800000> : vector<8xf32>
    %23 = vector.multi_reduction <maximumf>, %22, %cst_7 [1] : vector<8x128xf32> to vector<8xf32>
    %24 = vector.shape_cast %23 : vector<8xf32> to vector<8x1xf32>
    %25 = vector.shape_cast %20 : vector<8x1xf32> to vector<8x1xf32>
    %26 = vector.broadcast %25 : vector<8x1xf32> to vector<8x128xf32>
    %27 = vector.shape_cast %24 : vector<8x1xf32> to vector<8x1xf32>
    %28 = vector.broadcast %27 : vector<8x1xf32> to vector<8x128xf32>
    %29 = arith.select %5, %26, %28 : vector<8x128xi1>, vector<8x128xf32>
    %30 = arith.subf %0, %29 : vector<8x128xf32>
    %31 = math.exp %30 : vector<8x128xf32>
    %cst_8 = arith.constant 0.000000e+00 : f32
    %32 = vector.broadcast %cst_8 : f32 to vector<8x128xf32>
    %33 = arith.select %5, %31, %32 : vector<8x128xi1>, vector<8x128xf32>
    %cst_9 = arith.constant dense<0.000000e+00> : vector<8xf32>
    %34 = vector.multi_reduction <add>, %33, %cst_9 [1] : vector<8x128xf32> to vector<8xf32>
    %35 = vector.shape_cast %34 : vector<8xf32> to vector<8x1xf32>
    %cst_10 = arith.constant 0.000000e+00 : f32
    %36 = vector.broadcast %cst_10 : f32 to vector<8x128xf32>
    %37 = arith.select %10, %31, %36 : vector<8x128xi1>, vector<8x128xf32>
    %cst_11 = arith.constant dense<0.000000e+00> : vector<8xf32>
    %38 = vector.multi_reduction <add>, %37, %cst_11 [1] : vector<8x128xf32> to vector<8xf32>
    %39 = vector.shape_cast %38 : vector<8xf32> to vector<8x1xf32>
    %40 = vector.broadcast %11 : vector<8x1xi32> to vector<8x128xi32>
    %41 = arith.cmpi eq, %2, %40 : vector<8x128xi32>
    %cst_12 = arith.constant 0.000000e+00 : f32
    %42 = vector.broadcast %cst_12 : f32 to vector<8x128xf32>
    %43 = arith.select %41, %0, %42 : vector<8x128xi1>, vector<8x128xf32>
    %cst_13 = arith.constant dense<0.000000e+00> : vector<8xf32>
    %44 = vector.multi_reduction <add>, %43, %cst_13 [1] : vector<8x128xf32> to vector<8xf32>
    %45 = vector.shape_cast %44 : vector<8xf32> to vector<8x1xf32>
    %46 = vector.broadcast %14 : vector<8x1xi32> to vector<8x128xi32>
    %47 = arith.cmpi eq, %2, %46 : vector<8x128xi32>
    %cst_14 = arith.constant 0.000000e+00 : f32
    %48 = vector.broadcast %cst_14 : f32 to vector<8x128xf32>
    %49 = arith.select %47, %0, %48 : vector<8x128xi1>, vector<8x128xf32>
    %cst_15 = arith.constant dense<0.000000e+00> : vector<8xf32>
    %50 = vector.multi_reduction <add>, %49, %cst_15 [1] : vector<8x128xf32> to vector<8xf32>
    %51 = vector.shape_cast %50 : vector<8xf32> to vector<8x1xf32>
    %52 = math.log %35 : vector<8x1xf32>
    %53 = arith.addf %20, %52 : vector<8x1xf32>
    %54 = arith.subf %53, %45 : vector<8x1xf32>
    %55 = vector.shape_cast %54 : vector<8x1xf32> to vector<1x8x1xf32>
    %cst_16 = arith.constant dense<0.000000e+00> : vector<1xf32>
    %56 = vector.multi_reduction <add>, %55, %cst_16 [1, 2] : vector<1x8x1xf32> to vector<1xf32>
    %57 = vector.shape_cast %56 : vector<1xf32> to vector<1x1x1xf32>
    %58 = vector.extract %57[0, 0, 0] : f32 from vector<1x1x1xf32>
    %cst_17 = arith.constant 1.250000e-01 : f32
    %59 = arith.mulf %58, %cst_17 : f32
    %60 = vector.broadcast %20 : vector<8x1xf32> to vector<8x128xf32>
    %61 = arith.cmpf oeq, %0, %60 : vector<8x128xf32>
    %62 = arith.andi %5, %61 : vector<8x128xi1>
    %cst_18 = arith.constant 1.280000e+02 : f32
    %63 = vector.broadcast %cst_18 : f32 to vector<8x128xf32>
    %64 = arith.select %62, %3, %63 : vector<8x128xi1>, vector<8x128xf32>
    %cst_19 = arith.constant dense<0x7F800000> : vector<8xf32>
    %65 = vector.multi_reduction <minimumf>, %64, %cst_19 [1] : vector<8x128xf32> to vector<8xf32>
    %66 = vector.shape_cast %65 : vector<8xf32> to vector<8x1xf32>
    %67 = arith.sitofp %11 : vector<8x1xi32> to vector<8x1xf32>
    %68 = arith.cmpf oeq, %66, %67 : vector<8x1xf32>
    %69 = arith.extui %68 : vector<8x1xi1> to vector<8x1xi32>
    %70 = arith.sitofp %69 : vector<8x1xi32> to vector<8x1xf32>
    %71 = vector.shape_cast %70 : vector<8x1xf32> to vector<1x8x1xf32>
    %cst_20 = arith.constant dense<0.000000e+00> : vector<1xf32>
    %72 = vector.multi_reduction <add>, %71, %cst_20 [1, 2] : vector<1x8x1xf32> to vector<1xf32>
    %73 = vector.shape_cast %72 : vector<1xf32> to vector<1x1x1xf32>
    %74 = vector.extract %73[0, 0, 0] : f32 from vector<1x1x1xf32>
    %cst_21 = arith.constant 1.250000e+01 : f32
    %75 = arith.mulf %74, %cst_21 : f32
    %cst_22 = arith.constant 1.000000e+02 : f32
    %76 = arith.subf %cst_22, %75 : f32
    %cst_23 = arith.constant 3.100000e+01 : f32
    %77 = vector.broadcast %cst_23 : f32 to vector<8x1xf32>
    %78 = arith.cmpf one, %66, %77 : vector<8x1xf32>
    %79 = arith.extui %78 : vector<8x1xi1> to vector<8x1xi32>
    %80 = arith.sitofp %79 : vector<8x1xi32> to vector<8x1xf32>
    %81 = arith.subf %80, %16 : vector<8x1xf32>
    %82 = math.absf %81 : vector<8x1xf32>
    %83 = vector.shape_cast %82 : vector<8x1xf32> to vector<1x8x1xf32>
    %cst_24 = arith.constant dense<0.000000e+00> : vector<1xf32>
    %84 = vector.multi_reduction <add>, %83, %cst_24 [1, 2] : vector<1x8x1xf32> to vector<1xf32>
    %85 = vector.shape_cast %84 : vector<1xf32> to vector<1x1x1xf32>
    %86 = vector.extract %85[0, 0, 0] : f32 from vector<1x1x1xf32>
    %cst_25 = arith.constant 1.250000e-01 : f32
    %87 = arith.mulf %86, %cst_25 : f32
    %88 = math.log %39 : vector<8x1xf32>
    %89 = arith.addf %24, %88 : vector<8x1xf32>
    %90 = arith.subf %89, %51 : vector<8x1xf32>
    %91 = vector.shape_cast %90 : vector<8x1xf32> to vector<1x8x1xf32>
    %cst_26 = arith.constant dense<0.000000e+00> : vector<1xf32>
    %92 = vector.multi_reduction <add>, %91, %cst_26 [1, 2] : vector<1x8x1xf32> to vector<1xf32>
    %93 = vector.shape_cast %92 : vector<1xf32> to vector<1x1x1xf32>
    %94 = vector.extract %93[0, 0, 0] : f32 from vector<1x1x1xf32>
    %cst_27 = arith.constant 1.250000e-01 : f32
    %95 = arith.mulf %94, %cst_27 : f32
    %96 = arith.cmpf oeq, %51, %24 : vector<8x1xf32>
    %97 = arith.extui %96 : vector<8x1xi1> to vector<8x1xi32>
    %98 = arith.sitofp %97 : vector<8x1xi32> to vector<8x1xf32>
    %99 = vector.shape_cast %98 : vector<8x1xf32> to vector<1x8x1xf32>
    %cst_28 = arith.constant dense<0.000000e+00> : vector<1xf32>
    %100 = vector.multi_reduction <add>, %99, %cst_28 [1, 2] : vector<1x8x1xf32> to vector<1xf32>
    %101 = vector.shape_cast %100 : vector<1xf32> to vector<1x1x1xf32>
    %102 = vector.extract %101[0, 0, 0] : f32 from vector<1x1x1xf32>
    %cst_29 = arith.constant 1.250000e+01 : f32
    %103 = arith.mulf %102, %cst_29 : f32
    %cst_30 = arith.constant 1.000000e+02 : f32
    %104 = arith.subf %cst_30, %103 : f32
    %c0_31 = arith.constant 0 : index
    %105 = memref.load %arg2[%c0_31] : memref<8xf32, #tpu.memory_space<smem>>
    memref.store %59, %arg2[%c0_31] : memref<8xf32, #tpu.memory_space<smem>>
    %c1 = arith.constant 1 : index
    %106 = memref.load %arg2[%c1] : memref<8xf32, #tpu.memory_space<smem>>
    memref.store %76, %arg2[%c1] : memref<8xf32, #tpu.memory_space<smem>>
    %c2 = arith.constant 2 : index
    %107 = memref.load %arg2[%c2] : memref<8xf32, #tpu.memory_space<smem>>
    memref.store %87, %arg2[%c2] : memref<8xf32, #tpu.memory_space<smem>>
    %c3 = arith.constant 3 : index
    %108 = memref.load %arg2[%c3] : memref<8xf32, #tpu.memory_space<smem>>
    memref.store %95, %arg2[%c3] : memref<8xf32, #tpu.memory_space<smem>>
    %c4 = arith.constant 4 : index
    %109 = memref.load %arg2[%c4] : memref<8xf32, #tpu.memory_space<smem>>
    memref.store %104, %arg2[%c4] : memref<8xf32, #tpu.memory_space<smem>>
    %cst_32 = arith.constant 0.000000e+00 : f32
    %c5 = arith.constant 5 : index
    %110 = memref.load %arg2[%c5] : memref<8xf32, #tpu.memory_space<smem>>
    memref.store %cst_32, %arg2[%c5] : memref<8xf32, #tpu.memory_space<smem>>
    %cst_33 = arith.constant 0.000000e+00 : f32
    %c6 = arith.constant 6 : index
    %111 = memref.load %arg2[%c6] : memref<8xf32, #tpu.memory_space<smem>>
    memref.store %cst_33, %arg2[%c6] : memref<8xf32, #tpu.memory_space<smem>>
    %cst_34 = arith.constant 0.000000e+00 : f32
    %c7 = arith.constant 7 : index
    %112 = memref.load %arg2[%c7] : memref<8xf32, #tpu.memory_space<smem>>
    memref.store %cst_34, %arg2[%c7] : memref<8xf32, #tpu.memory_space<smem>>
    return
  }
}

</mosaic_0001>

<bundles_post_ra>
// kernel: tpu_custom_call.1
= control target key start
LH: loop header
LB: loop body
LE: loop exit
PB: predicated region body
PF: predicated region fallthrough
CT: control target
= control target key end

     0   :  { %v14_v0 = vlaneseq  ;;  %s264_s0 = inlined_call_operand.vmem [shape: f32[8,128], index: 0, kind: input, shape index: {}]   ;;  %s265_s1 = inlined_call_operand.vmem [shape: s32[8,3], index: 1, kind: input, shape index: {}]   ;;  %s266_s2 = inlined_call_operand.hbm [shape: f32[8], index: 2, kind: output, shape index: {}]  }
   0x1   :  { %v232_v1 = vld [vmem:[%s265_s1] sm:$0xff] }
   0x2   :  { %7 = vsyncpa [#allocation3], 0  ;;  %v208_v2 = vmov 0   ;;  %v209_v3 = vmov 1   ;;  %v12_v4 = vld [vmem:[%s264_s0] sm:$0xff]  ;;  %v15_v5 = vand.u32 127, %v14_v0  ;;  %v22_v25 = vcvt.s32.f32 %v232_v1 }
   0x3   :  { %187 = vset.pattern.permute.xlu1 %v208_v2  ;;  %189 = vset.pattern.permute.xlu0 %v209_v3  ;;  %v21_v6 = vadd.s32 32, %v232_v1  ;;  %v210_v26 = vmov 0.0   ;;  %s211_s0 = smov 126   ;;  %vm57_vm11 = vcmask 7168   ;;  %s212_s1 = smov 0.0  }
   0x4   :  { %40 = vperm.xlu1 %187, %v232_v1   ;;  %vm17_vm0 = vcmp.lt.s32.totalorder %v15_v5, 32  ;;  %vm18_vm1 = vcmp.ge.s32.totalorder %v15_v5, 32  ;;  %vm19_vm2 = vcmp.lt.s32.totalorder %v15_v5, 48  ;;  %v16_v11 = vcvt.s32.f32 %v15_v5  ;;  %150 = sst [smem:[#allocation2 + $0x5]] %s212_s1  ;;  %s196_s27 = scalar_lea.hbm %s266_s2, 16 }
   0x5   :  { %v23_v7 = vsel %vm17_vm0, %v12_v4, -3e+38  ;;  %vm240_vm3 = vmand %vm18_vm1, %vm19_vm2  ;;  %152 = sst [smem:[#allocation2 + $0x6]] %s212_s1  ;;  %p197_p0 = scmp.ne.s32.totalorder %s266_s2, %s196_s27 }
   0x6   :  { %24 = vmax.xlane.f32.xlu0 %v23_v7  ;;  %v26_v9 = vsel %vm240_vm3, %v12_v4, -3e+38  ;;  %154 = sst [smem:[#allocation2 + $0x7]] %s212_s1  ;;  %p200_p1 = scmp.lt.u32.totalorder %s196_s27, %s266_s2 }
   0x8   :  { %188 = vset.pattern.permute.xlu1 %v209_v3  ;;  %p202_p2 = pnand %p200_p1, %p197_p0 }
   0x9   :  { %47 = vperm.xlu1 %188, %v21_v6  }
   0xa   :  { %27 = vmax.xlane.f32.xlu0 %v26_v9 }
  0x83   :  { %v41_v10 = vpop.permute.xlu1 %40 }
  0x84   :  { %vm42_vm6 = vcmp.eq.s32.totalorder %v15_v5, %v41_v10 }
  0x85   :  { %v43_v17 = vsel %vm42_vm6, %v12_v4, 0.0 }
  0x88   :  { %v48_v14 = vpop.permute.xlu1 %47 }
  0x89   :  { %vm49_vm7 = vcmp.eq.s32.totalorder %v15_v5, %v48_v14 }
  0x8a   :  { %v50_v20 = vsel %vm49_vm7, %v12_v4, 0.0 }
  0x93   :  { %v25_v12 = vpop.xlane.xlu0 %24 }
  0x94   :  { %vm69_vm4 = vcmp.eq.f32.partialorder %v12_v4, %v25_v12 }
  0x95   :  { %vm70_vm5 = vmand %vm17_vm0, %vm69_vm4 }
  0x96   :  { %v71_v13 = vsel %vm70_vm5, %v16_v11, 128.0 }
  0x97   :  { %72 = vmin.xlane.f32.xlu0 %v71_v13  ;;  %v28_v15 = vpop.xlane.xlu0 %27 }
  0x98   :  { %v29_v16 = vsel %vm17_vm0, %v25_v12, %v28_v15 }
  0x99   :  { %v30_v18 = vsub.f32 %v12_v4, %v29_v16 }
  0x9b   :  { %v31_v19 = vmul.f32 1.442695, %v30_v18  ;;  %44 = vadd.xlane.f32.xlu0 %v43_v17 }
  0x9d   :  { %190 = vpow2.f32 %v31_v19 }
  0x9f   :  { %51 = vadd.xlane.f32.xlu0 %v50_v20 }
  0xa7   :  { %v191_v21 = vpop.eup %190 }
  0xa8   :  { %v36_v22 = vsel %vm240_vm3, %v191_v21, 0.0  ;;  %v33_v23 = vsel %vm17_vm0, %v191_v21, 0.0 }
  0xa9   :  { %37 = vadd.xlane.f32.xlu0 %v36_v22  ;;  %34 = vadd.xlane.f32.xlu1 %v33_v23 }
 0x124   :  { %v73_v24 = vpop.xlane.xlu0 %72 }
 0x125   :  { %vm89_vm8 = vcmp.ne.f32.partialorder %v73_v24, 31.0  ;;  %vm74_vm10 = vcmp.eq.f32.partialorder %v73_v24, %v22_v25 }
 0x126   :  { %v169_v27 = vsel %vm89_vm8, 1.0, %v210_v26  ;;  %v168_v42 = vsel %vm74_vm10, 1.0, %v210_v26 }
 0x127   :  { %v92_v28 = vsub.f32 %v169_v27, %v22_v25  ;;  %v77_v45 = vsel %vm57_vm11, %v168_v42, 0.0 }
 0x128   :  { %v45_v29 = vpop.xlane.xlu0 %44 }
 0x129   :  { %v93_v30 = vand.u32 2147483647, %v92_v28 }
 0x12b   :  { %95 = vrot.lane.b32.xlu0 %v93_v30, %s211_s0 }
 0x12c   :  { %v52_v31 = vpop.xlane.xlu0 %51 }
 0x12d   :  { %vm124_vm9 = vcmp.eq.f32.partialorder %v52_v31, %v28_v15 }
 0x12e   :  { %v170_v32 = vsel %vm124_vm9, 1.0, %v210_v26 }
 0x12f   :  { %v127_v49 = vsel %vm57_vm11, %v170_v32, 0.0 }
 0x136   :  { %v35_v33 = vpop.xlane.xlu1 %34  ;;  %v38_v34 = vpop.xlane.xlu0 %37 }
 0x137   :  { %192 = vlog2.f32 %v35_v33 }
 0x138   :  { %194 = vlog2.f32 %v38_v34 }
 0x141   :  { %v193_v35 = vpop.eup %192 }
 0x142   :  { %v195_v36 = vpop.eup %194  ;;  %v54_v37 = vmul.f32 0.6931472, %v193_v35 }
 0x143   :  { %v110_v38 = vmul.f32 0.6931472, %v195_v36 }
 0x144   :  { %v55_v39 = vadd.f32 %v54_v37, %v25_v12 }
 0x145   :  { %v111_v40 = vadd.f32 %v110_v38, %v28_v15 }
 0x146   :  { %v56_v41 = vsub.f32 %v55_v39, %v45_v29 }
 0x147   :  { %v112_v44 = vsub.f32 %v111_v40, %v52_v31 }
 0x148   :  { %v58_v43 = vsel %vm57_vm11, %v56_v41, 0.0 }
 0x149   :  { %59 = vadd.xlane.f32.xlu1 %v58_v43  ;;  %v113_v46 = vsel %vm57_vm11, %v112_v44, 0.0 }
 0x14a   :  { %78 = vadd.xlane.f32.xlu0 %v77_v45 }
 0x14d   :  { %114 = vadd.xlane.f32.xlu1 %v113_v46 }
 0x19d   :  { %v96_v47 = vpop.permute.xlu0 %95 }
 0x19e   :  { %v98_v48 = vsel %vm57_vm11, %v96_v47, 0.0 }
 0x19f   :  { %99 = vadd.xlane.f32.xlu1 %v98_v48 }
 0x1a3   :  { %128 = vadd.xlane.f32.xlu1 %v127_v49 }
 0x1d6   :  { %v60_v50 = vpop.xlane.xlu1 %59 }
 0x1d7   :  { %v61_v51 = vrot.slane %v60_v50, 4  ;;  %v79_v52 = vpop.xlane.xlu0 %78 }
 0x1d8   :  { %v80_v53 = vrot.slane %v79_v52, 4 }
 0x1d9   :  { %v62_v54 = vadd.f32 %v61_v51, %v60_v50 }
 0x1da   :  { %v81_v55 = vadd.f32 %v80_v53, %v79_v52  ;;  %v115_v0 = vpop.xlane.xlu1 %114 }
 0x1db   :  { %v63_v56 = vrot.slane %v62_v54, 2  ;;  %v116_v1 = vrot.slane %v115_v0, 4 }
 0x1dc   :  { %v82_v57 = vrot.slane %v81_v55, 2 }
 0x1dd   :  { %v64_v58 = vadd.f32 %v63_v56, %v62_v54  ;;  %v117_v2 = vadd.f32 %v116_v1, %v115_v0 }
 0x1de   :  { %v83_v59 = vadd.f32 %v82_v57, %v81_v55 }
 0x1df   :  { %v65_v60 = vrot.slane %v64_v58, 1  ;;  %v118_v3 = vrot.slane %v117_v2, 2 }
 0x1e0   :  { %v84_v61 = vrot.slane %v83_v59, 1 }
 0x1e1   :  { %v66_v62 = vadd.f32 %v65_v60, %v64_v58  ;;  %v119_v8 = vadd.f32 %v118_v3, %v117_v2 }
 0x1e2   :  { %v85_v63 = vadd.f32 %v84_v61, %v83_v59 }
 0x1e3   :  { %171 = vpush %v66_v62  ;;  %v120_v13 = vrot.slane %v119_v8, 1 }
 0x1e4   :  { %173 = vpush %v85_v63 }
 0x1e5   :  { %v121_v18 = vadd.f32 %v120_v13, %v119_v8 }
 0x214   :  { %s172_s13 = spop %171 }
 0x215   :  { %s68_s14 = smul.f32 0.125, %s172_s13  ;;  %s174_s15 = spop %173 }
 0x216   :  { %s87_s16 = smul.f32 12.5, %s174_s15 }
 0x217   :  { %140 = sst [smem:[#allocation2]] %s68_s14 }
 0x218   :  { %s88_s17 = ssub.f32 100.0, %s87_s16 }
 0x21a   :  { %142 = sst [smem:[#allocation2 + $0x1]] %s88_s17 }
 0x22c   :  { %v100_v4 = vpop.xlane.xlu1 %99 }
 0x22d   :  { %v101_v5 = vrot.slane %v100_v4, 4 }
 0x22f   :  { %v102_v6 = vadd.f32 %v101_v5, %v100_v4 }
 0x230   :  { %v129_v7 = vpop.xlane.xlu1 %128 }
 0x231   :  { %v103_v9 = vrot.slane %v102_v6, 2  ;;  %v130_v10 = vrot.slane %v129_v7, 4 }
 0x233   :  { %v131_v11 = vadd.f32 %v130_v10, %v129_v7  ;;  %v104_v12 = vadd.f32 %v103_v9, %v102_v6 }
 0x235   :  { %v132_v14 = vrot.slane %v131_v11, 2  ;;  %v105_v15 = vrot.slane %v104_v12, 1 }
 0x237   :  { %v133_v16 = vadd.f32 %v132_v14, %v131_v11  ;;  %v106_v17 = vadd.f32 %v105_v15, %v104_v12 }
 0x239   :  { %175 = vpush %v106_v17  ;;  %v134_v19 = vrot.slane %v133_v16, 1 }
 0x23a   :  { %177 = vpush %v121_v18 }
 0x23b   :  { %v135_v20 = vadd.f32 %v134_v19, %v133_v16 }
 0x23d   :  { %179 = vpush %v135_v20 }
 0x26a   :  { %s176_s18 = spop %175 }
 0x26b   :  { %s108_s19 = smul.f32 0.125, %s176_s18  ;;  %s178_s20 = spop %177 }
 0x26c   :  { %s123_s21 = smul.f32 0.125, %s178_s20 }
 0x26d   :  { %144 = sst [smem:[#allocation2 + $0x2]] %s108_s19 }
 0x26e   :  { %146 = sst [smem:[#allocation2 + $0x3]] %s123_s21  ;;  %s180_s22 = spop %179 }
 0x26f   :  { %s137_s23 = smul.f32 12.5, %s180_s22 }
 0x271   :  { %s138_s24 = ssub.f32 100.0, %s137_s23 }
 0x273   :  { %148 = sst [smem:[#allocation2 + $0x4]] %s138_s24 }
 0x274   :  { %205 = shalt.err (!%p202_p2)
}
 0x275   :  { %s213_s4 = smov [#allocation2]  }
 0x276   :  { %162 = dma.smem_to_hbm %s213_s4, 16, %s266_s2, [#allocation3]  }
 0x277   :  { %206 = dma.done.wait [#allocation3], 16  }
 0x278   :  { %207 = vsyncadd [#allocation3], 4294967280 }
 0x279   :  { %166 = sfence }
 0x27a   :  { %167 = vsyncpa [#allocation3], 1 }

</bundles_post_ra>
